<compile_context>
chip_gen: v7x
topology: tpu7x:2x2x1
jax: 0.10.0
libtpu: 0.0.40
codegen_flags: <defaults>
</compile_context>

<pallas_src>
import functools

import jax
import jax.numpy as jnp
from jax import lax
from jax.experimental import pallas as pl
from jax.experimental.pallas import tpu as pltpu

MARK_NAMES = ("width", "length", "angle")      # mappings_from_config(config)
MARKS_CLASSES = 8                              # config['model']['marks_classes']
HIDDEN_DIMS = (16,)                            # config['model']['hidden_dims']
BACKBONE_OUT_CHANNELS = HIDDEN_DIMS[0]

_VMEM_LIMIT_BYTES = 32 * 1024 * 1024           # safe on every gen (v7x: 64 MiB phys)
_TILE_M_CAP = 16384                            # pixels per fused-conv grid step


def _round_up(n, m):
    return ((n + m - 1) // m) * m


# ----------------------------- fused conv kernel -----------------------------

def _fused_conv_kernel(x_ref, w1_ref, b1_ref, w2_ref, b2_ref, wh_ref, bh_ref,
                       vec_ref, mask_ref, *mark_refs,
                       marks_classes, mark_row0, mark_stride):
    # TODO(synk): the real Unet backbone is an external module whose definition
    # is not provided; stand-in is a 2-layer pointwise-conv stack (3->16->16).
    x = x_ref[0]                                              # (3, m) f32
    # Layer 1 (3->16): K=3 is degenerate for the MXU -> VPU broadcast-FMAs,
    # bias folded into the first FMA.
    w1 = w1_ref[...]
    h = w1[:, 0:1] * x[0:1, :] + b1_ref[...]
    for ci in range(1, x.shape[0]):
        h = h + w1[:, ci:ci + 1] * x[ci:ci + 1, :]
    h = jnp.maximum(h, 0.0)                                   # (16, m)

    # Layer 2 (16->16): MXU, bf16 operands, f32 accumulation.
    feat = jnp.dot(w2_ref[...], h.astype(jnp.bfloat16),
                   preferred_element_type=jnp.float32)
    feat = jnp.maximum(feat + b2_ref[...], 0.0)               # (16, m)

    # All heads (vec-field+mask 16->3 plus the three 16->8 mark heads) fused
    # into a single (32, 16) MXU dot; head rows are 8-aligned so every output
    # slice below is a clean sublane-aligned copy.
    heads = jnp.dot(wh_ref[...], feat.astype(jnp.bfloat16),
                    preferred_element_type=jnp.float32) + bh_ref[...]

    vec_ref[0] = heads[0:2, :].astype(vec_ref.dtype)
    mask_ref[0] = jax.nn.sigmoid(heads[2:3, :]).astype(mask_ref.dtype)
    for i, mk_ref in enumerate(mark_refs):
        r0 = mark_row0 + i * mark_stride
        mk_ref[0] = heads[r0:r0 + marks_classes, :].astype(mk_ref.dtype)


def _pick_tile_m(hw, n):
    # Lane-dense tiles (multiple of 128) large enough to amortise the ~0.35us
    # per-grid-step overhead; blocks stay a few MiB, far under v7x's 64 MiB.
    if hw % 128 == 0:
        tile = min(_TILE_M_CAP, hw)
    elif hw <= _TILE_M_CAP:
        tile = hw                          # full-extent block: always legal
    else:
        tile = _TILE_M_CAP
    # v7x has two TensorCores and shards "parallel" grid axes across them;
    # never let a batch-1 call collapse to a single grid step.
    if n == 1 and tile >= hw and hw > 256:
        tile = _round_up((hw + 1) // 2, 128)
    return tile


def fused_backbone_and_heads(x, w1, b1, w2_bf16, b2, wh_bf16, bh):
    """x: (N, 3, H*W) f32 -> (vector (N,2,HW), mask (N,1,HW), mark_i (N,K,HW)...)."""
    N, cin, HW = x.shape
    cb = BACKBONE_OUT_CHANNELS
    K = MARKS_CLASSES
    n_marks = len(MARK_NAMES)
    head_rows = wh_bf16.shape[0]
    tile_m = _pick_tile_m(HW, N)
    grid = (N, pl.cdiv(HW, tile_m))

    xmap = lambda n, m: (n, 0, m)
    wmap = lambda n, m: (0, 0)

    in_specs = [
        pl.BlockSpec((1, cin, tile_m), xmap),
        pl.BlockSpec((cb, cin), wmap), pl.BlockSpec((cb, 1), wmap),
        pl.BlockSpec((cb, cb), wmap), pl.BlockSpec((cb, 1), wmap),
        pl.BlockSpec((head_rows, cb), wmap), pl.BlockSpec((head_rows, 1), wmap),
    ]
    out_specs = [pl.BlockSpec((1, 2, tile_m), xmap),
                 pl.BlockSpec((1, 1, tile_m), xmap)] + \
                [pl.BlockSpec((1, K, tile_m), xmap) for _ in range(n_marks)]
    out_shape = (jax.ShapeDtypeStruct((N, 2, HW), jnp.float32),
                 jax.ShapeDtypeStruct((N, 1, HW), jnp.float32)) + \
                tuple(jax.ShapeDtypeStruct((N, K, HW), jnp.float32)
                      for _ in range(n_marks))

    kernel = functools.partial(_fused_conv_kernel, marks_classes=K,
                               mark_row0=8, mark_stride=_round_up(K, 8))
    return pl.pallas_call(
        kernel,
        out_shape=out_shape,
        grid_spec=pltpu.PrefetchScalarGridSpec(
            num_scalar_prefetch=0, grid=grid,
            in_specs=in_specs, out_specs=out_specs),
        compiler_params=pltpu.CompilerParams(
            dimension_semantics=("parallel", "parallel"),
            vmem_limit_bytes=_VMEM_LIMIT_BYTES),
    )(x, w1, b1, w2_bf16, b2, wh_bf16, bh)


# ------------------------- divergence / heatmap kernels -----------------------

def _gradient(v, axis):
    """torch.gradient-style central differences, one-sided at the edges."""
    n = v.shape[axis]
    nxt = pltpu.roll(v, shift=n - 1, axis=axis)        # v[i+1] (wrap masked below)
    prv = pltpu.roll(v, shift=1, axis=axis)            # v[i-1]
    idx = lax.broadcasted_iota(jnp.int32, v.shape, axis)
    return jnp.where(idx == 0, nxt - v,
                     jnp.where(idx == n - 1, v - prv, (nxt - prv) * 0.5))


def _heat_from_div_mask(div, m, w1_ref, b1_ref, w2_ref, b2_ref, n_hidden):
    # Conv2d(1->4, 1x1) -> ReLU -> Conv2d(4->1, 1x1), fully elementwise.
    dm = div * m
    heat = w2_ref[0] * jnp.maximum(dm * w1_ref[0] + b1_ref[0], 0.0) + b2_ref[0]
    for c in range(1, n_hidden):
        heat = heat + w2_ref[c] * jnp.maximum(dm * w1_ref[c] + b1_ref[c], 0.0)
    return heat


def _div_heat_kernel_full(vec_ref, mask_ref, w1_ref, b1_ref, w2_ref, b2_ref,
                          heat_ref, *, n_hidden):
    # Divergence(div_channels=[0, 1], mask_channel=2, sigmoid_on_mask=True);
    # the mask fed here already went through the sigmoid (same value either way).
    # TODO(synk): exact torch_divergence impl not provided; assuming
    # torch.gradient-style central differences with indexing='ij'.
    v0 = vec_ref[0, 0]
    v1 = vec_ref[0, 1]
    div = _gradient(v0, 0) + _gradient(v1, 1)
    heat = _heat_from_div_mask(div, mask_ref[0, 0],
                               w1_ref, b1_ref, w2_ref, b2_ref, n_hidden)
    heat_ref[0, 0] = heat.astype(heat_ref.dtype)


def _div_heat_kernel_tiled(vec_ref, vup_ref, vdn_ref, mask_ref,
                           w1_ref, b1_ref, w2_ref, b2_ref, heat_ref,
                           *, th, H, W, n_hidden):
    r = pl.program_id(1)
    v0 = vec_ref[0, 0]                              # (th, W) row component
    v1 = vec_ref[0, 1]                              # (th, W) col component
    up_row = vup_ref[0, 0, 7:8, :]                  # global row r*th-1 (junk & unused at r==0)
    dn_row = vdn_ref[0, 0, 0:1, :]                  # global row (r+1)*th (junk & unused at last r)

    nxt = jnp.concatenate([v0[1:, :], dn_row], axis=0)      # v0[i+1]
    prv = jnp.concatenate([up_row, v0[:-1, :]], axis=0)     # v0[i-1]
    grow = lax.broadcasted_iota(jnp.int32, v0.shape, 0) + r * th
    dv0 = jnp.where(grow == 0, nxt - v0,
                    jnp.where(grow == H - 1, v0 - prv, (nxt - prv) * 0.5))
    dv1 = _gradient(v1, 1)                          # columns are never split

    heat = _heat_from_div_mask(dv0 + dv1, mask_ref[0, 0],
                               w1_ref, b1_ref, w2_ref, b2_ref, n_hidden)
    heat_ref[0, 0] = heat.astype(heat_ref.dtype)


def _pick_row_tile(H, W):
    """None -> whole-image blocks; else a multiple-of-8 divisor of H."""
    if 16 * H * W <= (2 << 20) or H % 8 != 0:       # small image: whole-image path
        return None
    target = max(8, min(H // 2, (1 << 18) // max(W, 1)))   # ~1 MiB of rows / step
    t = (target // 8) * 8
    while t >= 8:
        if H % t == 0:
            return t
        t -= 8
    return None


def divergence_heatmap(vec, mask, w1, b1, w2, b2, *, row_tile=None):
    """vec: (N,2,H,W), mask: (N,1,H,W) (sigmoid already applied) -> (N,1,H,W)."""
    N, _, H, W = vec.shape
    n_hidden = int(w1.shape[0])
    smem = pl.BlockSpec(memory_space=pltpu.MemorySpace.SMEM)
    if row_tile is None:
        row_tile = _pick_row_tile(H, W)

    if row_tile is None or row_tile >= H:
        kernel = functools.partial(_div_heat_kernel_full, n_hidden=n_hidden)
        pmap = lambda n: (n, 0, 0, 0)
        return pl.pallas_call(
            kernel,
            out_shape=jax.ShapeDtypeStruct((N, 1, H, W), jnp.float32),
            grid_spec=pltpu.PrefetchScalarGridSpec(
                num_scalar_prefetch=0, grid=(N,),
                in_specs=[pl.BlockSpec((1, 2, H, W), pmap),
                          pl.BlockSpec((1, 1, H, W), pmap),
                          smem, smem, smem, smem],
                out_specs=pl.BlockSpec((1, 1, H, W), pmap)),
            compiler_params=pltpu.CompilerParams(
                dimension_semantics=("parallel",),
                vmem_limit_bytes=_VMEM_LIMIT_BYTES),
        )(vec, mask, w1, b1, w2, b2)

    th = int(row_tile)
    assert th % 8 == 0 and H % th == 0, (H, th)
    nrb8 = H // 8                                   # number of 8-row halo blocks
    kernel = functools.partial(_div_heat_kernel_tiled, th=th, H=H, W=W,
                               n_hidden=n_hidden)
    bmap = lambda n, r: (n, 0, r, 0)
    upmap = lambda n, r: (n, 0, jnp.maximum(r * (th // 8) - 1, 0), 0)
    dnmap = lambda n, r: (n, 0, jnp.minimum((r + 1) * (th // 8), nrb8 - 1), 0)
    return pl.pallas_call(
        kernel,
        out_shape=jax.ShapeDtypeStruct((N, 1, H, W), jnp.float32),
        grid_spec=pltpu.PrefetchScalarGridSpec(
            num_scalar_prefetch=0, grid=(N, H // th),
            in_specs=[pl.BlockSpec((1, 2, th, W), bmap),     # own rows, both channels
                      pl.BlockSpec((1, 1, 8, W), upmap),     # halo: row above (channel 0)
                      pl.BlockSpec((1, 1, 8, W), dnmap),     # halo: row below (channel 0)
                      pl.BlockSpec((1, 1, th, W), bmap),     # mask rows
                      smem, smem, smem, smem],
            out_specs=pl.BlockSpec((1, 1, th, W), bmap)),
        compiler_params=pltpu.CompilerParams(
            dimension_semantics=("parallel", "parallel"),
            vmem_limit_bytes=_VMEM_LIMIT_BYTES),
    )(vec, vec, vec, mask, w1, b1, w2, b2)


# ----------------------------- params / forward -----------------------------

def _init_conv1x1_t(key, cin, cout):
    """PyTorch Conv2d default init; weight returned transposed as (cout, cin)."""
    kw, kb = jax.random.split(key)
    bound = 1.0 / (cin ** 0.5)
    w_t = jax.random.uniform(kw, (cout, cin), jnp.float32, -bound, bound)
    b = jax.random.uniform(kb, (cout, 1), jnp.float32, -bound, bound)
    return w_t, b


def init_params(key):
    n_marks = len(MARK_NAMES)
    keys = jax.random.split(key, 5 + n_marks)
    cb = BACKBONE_OUT_CHANNELS
    p = {}
    # TODO(synk): real Unet backbone not provided; stand-in = 2x (1x1 conv+ReLU).
    p["bb_w1"], p["bb_b1"] = _init_conv1x1_t(keys[0], 3, cb)
    p["bb_w2"], p["bb_b2"] = _init_conv1x1_t(keys[1], cb, cb)
    p["vfm_w"], p["vfm_b"] = _init_conv1x1_t(keys[2], cb, 3)
    wms, bms = [], []
    for i in range(n_marks):
        wm, bm = _init_conv1x1_t(keys[3 + i], cb, MARKS_CLASSES)
        wms.append(wm)
        bms.append(bm)
    p["mark_w"] = jnp.stack(wms)                 # (n_marks, K, cb)
    p["mark_b"] = jnp.stack(bms)                 # (n_marks, K, 1)
    # div_linear_layer: Divergence -> Conv2d(1,4,1x1) -> ReLU -> Conv2d(4,1,1x1)
    w1, b1 = _init_conv1x1_t(keys[3 + n_marks], 1, 4)
    w2, b2 = _init_conv1x1_t(keys[4 + n_marks], 4, 1)
    p["heat_w1"], p["heat_b1"] = w1.reshape(4), b1.reshape(4)
    p["heat_w2"], p["heat_b2"] = w2.reshape(4), b2.reshape(1)
    return p


@jax.jit
def mpp_forward(params, x_nchw):
    N, C, H, W = x_nchw.shape
    K = MARKS_CLASSES
    Kp = _round_up(K, 8)
    n_marks = len(MARK_NAMES)
    cb = BACKBONE_OUT_CHANNELS

    x = x_nchw.reshape(N, C, H * W)              # free: NCHW is channels-major

    # Fuse the vec-field+mask head and the mark heads into one 8-row-aligned
    # weight matrix -> a single MXU dot in the kernel (rows 3..7 are zero pad).
    head_rows = 8 + n_marks * Kp
    wh = jnp.zeros((head_rows, cb), jnp.float32)
    bh = jnp.zeros((head_rows, 1), jnp.float32)
    wh = wh.at[0:3].set(params["vfm_w"])
    bh = bh.at[0:3].set(params["vfm_b"])
    for i in range(n_marks):
        wh = wh.at[8 + i * Kp:8 + i * Kp + K].set(params["mark_w"][i])
        bh = bh.at[8 + i * Kp:8 + i * Kp + K].set(params["mark_b"][i])

    outs = fused_backbone_and_heads(
        x, params["bb_w1"], params["bb_b1"],
        params["bb_w2"].astype(jnp.bfloat16), params["bb_b2"],
        wh.astype(jnp.bfloat16), bh)
    vec, mask = outs[0], outs[1]
    marks = outs[2:]

    vec = vec.reshape(N, 2, H, W)                # free reshapes (contiguous)
    mask = mask.reshape(N, 1, H, W)
    heat = divergence_heatmap(vec, mask,
                              params["heat_w1"], params["heat_b1"],
                              params["heat_w2"], params["heat_b2"])

    out = {"vector": vec, "mask": mask, "center_heatmap": heat}
    for name, mk in zip(MARK_NAMES, marks):
        out[f"mark_{name}"] = mk.reshape(N, K, H, W)
    return out


# --------------------------- pure-JAX reference ------------------------------

def _ref_gradient(a, axis):
    a = jnp.moveaxis(a, axis, -1)
    first = a[..., 1:2] - a[..., 0:1]
    last = a[..., -1:] - a[..., -2:-1]
    mid = (a[..., 2:] - a[..., :-2]) * 0.5
    return jnp.moveaxis(jnp.concatenate([first, mid, last], axis=-1), -1, axis)


def mpp_forward_reference(params, x_nchw):
    """Pure-JAX reference; bf16 matmul operands to match the kernel numerics."""
    N, C, H, W = x_nchw.shape
    K = MARKS_CLASSES
    x = x_nchw.reshape(N, C, H * W).astype(jnp.float32)

    w1, b1 = params["bb_w1"], params["bb_b1"]
    h = w1[:, 0][None, :, None] * x[:, 0][:, None, :] + b1[None]
    for c in range(1, w1.shape[1]):
        h = h + w1[:, c][None, :, None] * x[:, c][:, None, :]
    h = jnp.maximum(h, 0.0)

    feat = jnp.einsum("oc,ncm->nom", params["bb_w2"].astype(jnp.bfloat16),
                      h.astype(jnp.bfloat16),
                      preferred_element_type=jnp.float32) + params["bb_b2"][None]
    feat = jnp.maximum(feat, 0.0)
    fb = feat.astype(jnp.bfloat16)

    vfm = jnp.einsum("oc,ncm->nom", params["vfm_w"].astype(jnp.bfloat16), fb,
                     preferred_element_type=jnp.float32) + params["vfm_b"][None]
    vec = vfm[:, 0:2].reshape(N, 2, H, W)
    mask = jax.nn.sigmoid(vfm[:, 2:3]).reshape(N, 1, H, W)

    out = {"vector": vec, "mask": mask}
    for i, name in enumerate(MARK_NAMES):
        mk = jnp.einsum("oc,ncm->nom", params["mark_w"][i].astype(jnp.bfloat16),
                        fb, preferred_element_type=jnp.float32) \
             + params["mark_b"][i][None]
        out[f"mark_{name}"] = mk.reshape(N, K, H, W)

    div = _ref_gradient(vec[:, 0], 1) + _ref_gradient(vec[:, 1], 2)
    dm = div * mask[:, 0]
    w1h, b1h = params["heat_w1"], params["heat_b1"]
    w2h, b2h = params["heat_w2"], params["heat_b2"]
    hidden = jnp.maximum(dm[:, None] * w1h[None, :, None, None]
                         + b1h[None, :, None, None], 0.0)
    out["center_heatmap"] = (hidden * w2h[None, :, None, None]).sum(
        axis=1, keepdims=True) + b2h[0]
    return out


def _assert_close(name, got, want, atol, rtol):
    got = jnp.asarray(got).astype(jnp.float32)
    want = jnp.asarray(want).astype(jnp.float32)
    err = float(jnp.max(jnp.abs(got - want)))
    ref = float(jnp.max(jnp.abs(want)))
    assert err <= atol + rtol * ref, f"{name}: max|err|={err:.3e} (ref max {ref:.3e})"


if __name__ == "__main__":
    key = jax.random.PRNGKey(0)
    kp, kx1, kx2, kv, km = jax.random.split(key, 5)
    params = init_params(kp)

    # --- small forward (batch=2, 3x16x16) -----------------------------------
    x = jax.random.normal(kx1, (2, 3, 16, 16), jnp.float32)
    out = jax.block_until_ready(mpp_forward(params, x))
    assert out["vector"].shape == (2, 2, 16, 16)
    assert out["mask"].shape == (2, 1, 16, 16)
    assert out["center_heatmap"].shape == (2, 1, 16, 16)
    for name in MARK_NAMES:
        assert out[f"mark_{name}"].shape == (2, MARKS_CLASSES, 16, 16)
    ref = mpp_forward_reference(params, x)
    for name in out:
        _assert_close(name, out[name], ref[name], atol=3e-2, rtol=1e-2)

    # --- batch=1 forward: exercises the pixel-axis split that keeps >= 2 grid
    # steps for v7x's two TensorCores -----------------------------------------
    x1 = jax.random.normal(kx2, (1, 3, 32, 32), jnp.float32)
    out1 = jax.block_until_ready(mpp_forward(params, x1))
    ref1 = mpp_forward_reference(params, x1)
    for name in out1:
        _assert_close(name, out1[name], ref1[name], atol=3e-2, rtol=1e-2)

    # --- row-tiled divergence path (8-row halo blocks) vs whole-image path ---
    vec_t = jax.random.normal(kv, (2, 2, 32, 32), jnp.float32)
    mask_t = jax.nn.sigmoid(jax.random.normal(km, (2, 1, 32, 32), jnp.float32))
    h_full = divergence_heatmap(vec_t, mask_t, params["heat_w1"],
                                params["heat_b1"], params["heat_w2"],
                                params["heat_b2"])
    h_tiled = divergence_heatmap(vec_t, mask_t, params["heat_w1"],
                                 params["heat_b1"], params["heat_w2"],
                                 params["heat_b2"], row_tile=8)
    jax.block_until_ready((h_full, h_tiled))
    _assert_close("row_tiled_divergence", h_tiled, h_full, atol=1e-5, rtol=1e-5)

    print("KERNEL_OK")
</pallas_src>

<mosaic_0001>
module attributes {stable_mosaic.version = 11 : i64} {
  func.func @_fused_conv_kernel(%arg0: i32, %arg1: i32, %arg2: memref<1x3x256xf32, #tpu.memory_space<vmem>>, %arg3: memref<16x3xf32, #tpu.memory_space<vmem>>, %arg4: memref<16x1xf32, #tpu.memory_space<vmem>>, %arg5: memref<16x16xbf16, #tpu.memory_space<vmem>>, %arg6: memref<16x1xf32, #tpu.memory_space<vmem>>, %arg7: memref<32x16xbf16, #tpu.memory_space<vmem>>, %arg8: memref<32x1xf32, #tpu.memory_space<vmem>>, %arg9: memref<1x2x256xf32, #tpu.memory_space<vmem>>, %arg10: memref<1x1x256xf32, #tpu.memory_space<vmem>>, %arg11: memref<1x8x256xf32, #tpu.memory_space<vmem>>, %arg12: memref<1x8x256xf32, #tpu.memory_space<vmem>>, %arg13: memref<1x8x256xf32, #tpu.memory_space<vmem>>) attributes {dimension_semantics = [#tpu.dimension_semantics<parallel>, #tpu.dimension_semantics<parallel>], iteration_bounds = array<i64: 2, 1>, scalar_prefetch = 0 : i64, scratch_operands = 0 : i64, tpu.core_type = #tpu.core_type<tc>, window_params = [{transform_indices = @transform_0, window_bounds = array<i64: 1, 3, 256>}, {pipeline_mode = #tpu.pipeline_mode<synchronous>, transform_indices = @transform_1, window_bounds = array<i64: 16, 3>}, {pipeline_mode = #tpu.pipeline_mode<synchronous>, transform_indices = @transform_2, window_bounds = array<i64: 16, 1>}, {pipeline_mode = #tpu.pipeline_mode<synchronous>, transform_indices = @transform_3, window_bounds = array<i64: 16, 16>}, {pipeline_mode = #tpu.pipeline_mode<synchronous>, transform_indices = @transform_4, window_bounds = array<i64: 16, 1>}, {pipeline_mode = #tpu.pipeline_mode<synchronous>, transform_indices = @transform_5, window_bounds = array<i64: 32, 16>}, {pipeline_mode = #tpu.pipeline_mode<synchronous>, transform_indices = @transform_6, window_bounds = array<i64: 32, 1>}, {transform_indices = @transform_7, window_bounds = array<i64: 1, 2, 256>}, {transform_indices = @transform_8, window_bounds = array<i64: 1, 1, 256>}, {transform_indices = @transform_9, window_bounds = array<i64: 1, 8, 256>}, {transform_indices = @transform_10, window_bounds = array<i64: 1, 8, 256>}, {transform_indices = @transform_11, window_bounds = array<i64: 1, 8, 256>}]} {
    %c0 = arith.constant 0 : index
    %c0_0 = arith.constant 0 : index
    %c0_1 = arith.constant 0 : index
    %0 = vector.load %arg2[%c0, %c0_0, %c0_1] : memref<1x3x256xf32, #tpu.memory_space<vmem>>, vector<1x3x256xf32>
    %1 = vector.shape_cast %0 : vector<1x3x256xf32> to vector<3x256xf32>
    %c0_2 = arith.constant 0 : index
    %c0_3 = arith.constant 0 : index
    %2 = vector.load %arg3[%c0_2, %c0_3] : memref<16x3xf32, #tpu.memory_space<vmem>>, vector<16x3xf32>
    %3 = vector.extract_strided_slice %2 {offsets = [0, 0], sizes = [16, 1], strides = [1, 1]} : vector<16x3xf32> to vector<16x1xf32>
    %4 = vector.extract_strided_slice %1 {offsets = [0, 0], sizes = [1, 256], strides = [1, 1]} : vector<3x256xf32> to vector<1x256xf32>
    %5 = vector.broadcast %3 : vector<16x1xf32> to vector<16x256xf32>
    %6 = vector.broadcast %4 : vector<1x256xf32> to vector<16x256xf32>
    %7 = arith.mulf %5, %6 : vector<16x256xf32>
    %c0_4 = arith.constant 0 : index
    %c0_5 = arith.constant 0 : index
    %8 = vector.load %arg4[%c0_4, %c0_5] : memref<16x1xf32, #tpu.memory_space<vmem>>, vector<16x1xf32>
    %9 = vector.broadcast %8 : vector<16x1xf32> to vector<16x256xf32>
    %10 = arith.addf %7, %9 : vector<16x256xf32>
    %11 = vector.extract_strided_slice %2 {offsets = [0, 1], sizes = [16, 1], strides = [1, 1]} : vector<16x3xf32> to vector<16x1xf32>
    %12 = vector.extract_strided_slice %1 {offsets = [1, 0], sizes = [1, 256], strides = [1, 1]} : vector<3x256xf32> to vector<1x256xf32>
    %13 = vector.broadcast %11 : vector<16x1xf32> to vector<16x256xf32>
    %14 = vector.broadcast %12 : vector<1x256xf32> to vector<16x256xf32>
    %15 = arith.mulf %13, %14 : vector<16x256xf32>
    %16 = arith.addf %10, %15 : vector<16x256xf32>
    %17 = vector.extract_strided_slice %2 {offsets = [0, 2], sizes = [16, 1], strides = [1, 1]} : vector<16x3xf32> to vector<16x1xf32>
    %18 = vector.extract_strided_slice %1 {offsets = [2, 0], sizes = [1, 256], strides = [1, 1]} : vector<3x256xf32> to vector<1x256xf32>
    %19 = vector.broadcast %17 : vector<16x1xf32> to vector<16x256xf32>
    %20 = vector.broadcast %18 : vector<1x256xf32> to vector<16x256xf32>
    %21 = arith.mulf %19, %20 : vector<16x256xf32>
    %22 = arith.addf %16, %21 : vector<16x256xf32>
    %cst = arith.constant 0.000000e+00 : f32
    %23 = vector.broadcast %cst : f32 to vector<16x256xf32>
    %24 = arith.maximumf %22, %23 : vector<16x256xf32>
    %c0_6 = arith.constant 0 : index
    %c0_7 = arith.constant 0 : index
    %25 = vector.load %arg5[%c0_6, %c0_7] : memref<16x16xbf16, #tpu.memory_space<vmem>>, vector<16x16xbf16>
    %26 = arith.truncf %24 : vector<16x256xf32> to vector<16x256xbf16>
    %cst_8 = arith.constant dense<0.000000e+00> : vector<16x256xf32>
    %27 = tpu.matmul %25, %26, %cst_8 {dimension_numbers = #tpu.dot_dimension_numbers<[1], [0], [0], [1], [0, 0, 1, 1], [], []>} : vector<16x16xbf16>, vector<16x256xbf16>, vector<16x256xf32> -> vector<16x256xf32>
    %c0_9 = arith.constant 0 : index
    %c0_10 = arith.constant 0 : index
    %28 = vector.load %arg6[%c0_9, %c0_10] : memref<16x1xf32, #tpu.memory_space<vmem>>, vector<16x1xf32>
    %29 = vector.broadcast %28 : vector<16x1xf32> to vector<16x256xf32>
    %30 = arith.addf %27, %29 : vector<16x256xf32>
    %cst_11 = arith.constant 0.000000e+00 : f32
    %31 = vector.broadcast %cst_11 : f32 to vector<16x256xf32>
    %32 = arith.maximumf %30, %31 : vector<16x256xf32>
    %c0_12 = arith.constant 0 : index
    %c0_13 = arith.constant 0 : index
    %33 = vector.load %arg7[%c0_12, %c0_13] : memref<32x16xbf16, #tpu.memory_space<vmem>>, vector<32x16xbf16>
    %34 = arith.truncf %32 : vector<16x256xf32> to vector<16x256xbf16>
    %cst_14 = arith.constant dense<0.000000e+00> : vector<32x256xf32>
    %35 = tpu.matmul %33, %34, %cst_14 {dimension_numbers = #tpu.dot_dimension_numbers<[1], [0], [0], [1], [0, 0, 1, 1], [], []>} : vector<32x16xbf16>, vector<16x256xbf16>, vector<32x256xf32> -> vector<32x256xf32>
    %c0_15 = arith.constant 0 : index
    %c0_16 = arith.constant 0 : index
    %36 = vector.load %arg8[%c0_15, %c0_16] : memref<32x1xf32, #tpu.memory_space<vmem>>, vector<32x1xf32>
    %37 = vector.broadcast %36 : vector<32x1xf32> to vector<32x256xf32>
    %38 = arith.addf %35, %37 : vector<32x256xf32>
    %39 = vector.extract_strided_slice %38 {offsets = [0, 0], sizes = [2, 256], strides = [1, 1]} : vector<32x256xf32> to vector<2x256xf32>
    %c0_17 = arith.constant 0 : index
    %c0_18 = arith.constant 0 : index
    %c0_19 = arith.constant 0 : index
    %40 = vector.load %arg9[%c0_17, %c0_18, %c0_19] : memref<1x2x256xf32, #tpu.memory_space<vmem>>, vector<1x2x256xf32>
    %41 = vector.shape_cast %40 : vector<1x2x256xf32> to vector<2x256xf32>
    %42 = vector.shape_cast %39 : vector<2x256xf32> to vector<1x2x256xf32>
    tpu.vector_store %arg9[%c0_17, %c0_18, %c0_19], %42 {strides = array<i32>} : memref<1x2x256xf32, #tpu.memory_space<vmem>>, vector<1x2x256xf32>,
    %43 = vector.extract_strided_slice %38 {offsets = [2, 0], sizes = [1, 256], strides = [1, 1]} : vector<32x256xf32> to vector<1x256xf32>
    %44 = arith.negf %43 : vector<1x256xf32>
    %45 = math.exp %44 : vector<1x256xf32>
    %cst_20 = arith.constant 1.000000e+00 : f32
    %46 = vector.broadcast %cst_20 : f32 to vector<1x256xf32>
    %47 = arith.addf %46, %45 : vector<1x256xf32>
    %48 = arith.divf %46, %47 : vector<1x256xf32>
    %c0_21 = arith.constant 0 : index
    %c0_22 = arith.constant 0 : index
    %c0_23 = arith.constant 0 : index
    %49 = vector.load %arg10[%c0_21, %c0_22, %c0_23] : memref<1x1x256xf32, #tpu.memory_space<vmem>>, vector<1x1x256xf32>
    %50 = vector.shape_cast %49 : vector<1x1x256xf32> to vector<1x256xf32>
    %51 = vector.shape_cast %48 : vector<1x256xf32> to vector<1x1x256xf32>
    tpu.vector_store %arg10[%c0_21, %c0_22, %c0_23], %51 {strides = array<i32>} : memref<1x1x256xf32, #tpu.memory_space<vmem>>, vector<1x1x256xf32>,
    %52 = vector.extract_strided_slice %38 {offsets = [8, 0], sizes = [8, 256], strides = [1, 1]} : vector<32x256xf32> to vector<8x256xf32>
    %c0_24 = arith.constant 0 : index
    %c0_25 = arith.constant 0 : index
    %c0_26 = arith.constant 0 : index
    %53 = vector.load %arg11[%c0_24, %c0_25, %c0_26] : memref<1x8x256xf32, #tpu.memory_space<vmem>>, vector<1x8x256xf32>
    %54 = vector.shape_cast %53 : vector<1x8x256xf32> to vector<8x256xf32>
    %55 = vector.shape_cast %52 : vector<8x256xf32> to vector<1x8x256xf32>
    tpu.vector_store %arg11[%c0_24, %c0_25, %c0_26], %55 {strides = array<i32>} : memref<1x8x256xf32, #tpu.memory_space<vmem>>, vector<1x8x256xf32>,
    %56 = vector.extract_strided_slice %38 {offsets = [16, 0], sizes = [8, 256], strides = [1, 1]} : vector<32x256xf32> to vector<8x256xf32>
    %c0_27 = arith.constant 0 : index
    %c0_28 = arith.constant 0 : index
    %c0_29 = arith.constant 0 : index
    %57 = vector.load %arg12[%c0_27, %c0_28, %c0_29] : memref<1x8x256xf32, #tpu.memory_space<vmem>>, vector<1x8x256xf32>
    %58 = vector.shape_cast %57 : vector<1x8x256xf32> to vector<8x256xf32>
    %59 = vector.shape_cast %56 : vector<8x256xf32> to vector<1x8x256xf32>
    tpu.vector_store %arg12[%c0_27, %c0_28, %c0_29], %59 {strides = array<i32>} : memref<1x8x256xf32, #tpu.memory_space<vmem>>, vector<1x8x256xf32>,
    %60 = vector.extract_strided_slice %38 {offsets = [24, 0], sizes = [8, 256], strides = [1, 1]} : vector<32x256xf32> to vector<8x256xf32>
    %c0_30 = arith.constant 0 : index
    %c0_31 = arith.constant 0 : index
    %c0_32 = arith.constant 0 : index
    %61 = vector.load %arg13[%c0_30, %c0_31, %c0_32] : memref<1x8x256xf32, #tpu.memory_space<vmem>>, vector<1x8x256xf32>
    %62 = vector.shape_cast %61 : vector<1x8x256xf32> to vector<8x256xf32>
    %63 = vector.shape_cast %60 : vector<8x256xf32> to vector<1x8x256xf32>
    tpu.vector_store %arg13[%c0_30, %c0_31, %c0_32], %63 {strides = array<i32>} : memref<1x8x256xf32, #tpu.memory_space<vmem>>, vector<1x8x256xf32>,
    return
  }
  func.func @transform_0(%arg0: i32, %arg1: i32) -> (i32, i32, i32) {
    %c0_i32 = arith.constant 0 : i32
    %c0_i32_0 = arith.constant 0 : i32
    return %arg0, %c0_i32, %arg1 : i32, i32, i32
  }
  func.func @transform_1(%arg0: i32, %arg1: i32) -> (i32, i32) {
    %c0_i32 = arith.constant 0 : i32
    %c0_i32_0 = arith.constant 0 : i32
    %c0_i32_1 = arith.constant 0 : i32
    return %c0_i32, %c0_i32_0 : i32, i32
  }
  func.func @transform_2(%arg0: i32, %arg1: i32) -> (i32, i32) {
    %c0_i32 = arith.constant 0 : i32
    %c0_i32_0 = arith.constant 0 : i32
    %c0_i32_1 = arith.constant 0 : i32
    return %c0_i32, %c0_i32_0 : i32, i32
  }
  func.func @transform_3(%arg0: i32, %arg1: i32) -> (i32, i32) {
    %c0_i32 = arith.constant 0 : i32
    %c0_i32_0 = arith.constant 0 : i32
    %c0_i32_1 = arith.constant 0 : i32
    return %c0_i32, %c0_i32_0 : i32, i32
  }
  func.func @transform_4(%arg0: i32, %arg1: i32) -> (i32, i32) {
    %c0_i32 = arith.constant 0 : i32
    %c0_i32_0 = arith.constant 0 : i32
    %c0_i32_1 = arith.constant 0 : i32
    return %c0_i32, %c0_i32_0 : i32, i32
  }
  func.func @transform_5(%arg0: i32, %arg1: i32) -> (i32, i32) {
    %c0_i32 = arith.constant 0 : i32
    %c0_i32_0 = arith.constant 0 : i32
    %c0_i32_1 = arith.constant 0 : i32
    return %c0_i32, %c0_i32_0 : i32, i32
  }
  func.func @transform_6(%arg0: i32, %arg1: i32) -> (i32, i32) {
    %c0_i32 = arith.constant 0 : i32
    %c0_i32_0 = arith.constant 0 : i32
    %c0_i32_1 = arith.constant 0 : i32
    return %c0_i32, %c0_i32_0 : i32, i32
  }
  func.func @transform_7(%arg0: i32, %arg1: i32) -> (i32, i32, i32) {
    %c0_i32 = arith.constant 0 : i32
    %c0_i32_0 = arith.constant 0 : i32
    return %arg0, %c0_i32, %arg1 : i32, i32, i32
  }
  func.func @transform_8(%arg0: i32, %arg1: i32) -> (i32, i32, i32) {
    %c0_i32 = arith.constant 0 : i32
    %c0_i32_0 = arith.constant 0 : i32
    return %arg0, %c0_i32, %arg1 : i32, i32, i32
  }
  func.func @transform_9(%arg0: i32, %arg1: i32) -> (i32, i32, i32) {
    %c0_i32 = arith.constant 0 : i32
    %c0_i32_0 = arith.constant 0 : i32
    return %arg0, %c0_i32, %arg1 : i32, i32, i32
  }
  func.func @transform_10(%arg0: i32, %arg1: i32) -> (i32, i32, i32) {
    %c0_i32 = arith.constant 0 : i32
    %c0_i32_0 = arith.constant 0 : i32
    return %arg0, %c0_i32, %arg1 : i32, i32, i32
  }
  func.func @transform_11(%arg0: i32, %arg1: i32) -> (i32, i32, i32) {
    %c0_i32 = arith.constant 0 : i32
    %c0_i32_0 = arith.constant 0 : i32
    return %arg0, %c0_i32, %arg1 : i32, i32, i32
  }
}

module attributes {stable_mosaic.version = 11 : i64} {
  func.func @_div_heat_kernel_full(%arg0: i32, %arg1: memref<1x2x16x16xf32, #tpu.memory_space<vmem>>, %arg2: memref<1x1x16x16xf32, #tpu.memory_space<vmem>>, %arg3: memref<4xf32, #tpu.memory_space<smem>>, %arg4: memref<4xf32, #tpu.memory_space<smem>>, %arg5: memref<4xf32, #tpu.memory_space<smem>>, %arg6: memref<1xf32, #tpu.memory_space<smem>>, %arg7: memref<1x1x16x16xf32, #tpu.memory_space<vmem>>) attributes {dimension_semantics = [#tpu.dimension_semantics<parallel>], iteration_bounds = array<i64: 2>, scalar_prefetch = 0 : i64, scratch_operands = 0 : i64, tpu.core_type = #tpu.core_type<tc>, window_params = [{transform_indices = @transform_0, window_bounds = array<i64: 1, 2, 16, 16>}, {transform_indices = @transform_1, window_bounds = array<i64: 1, 1, 16, 16>}, {transform_indices = @transform_2, window_bounds = array<i64: 4>}, {transform_indices = @transform_3, window_bounds = array<i64: 4>}, {transform_indices = @transform_4, window_bounds = array<i64: 4>}, {transform_indices = @transform_5, window_bounds = array<i64: 1>}, {transform_indices = @transform_6, window_bounds = array<i64: 1, 1, 16, 16>}]} {
    %c0 = arith.constant 0 : index
    %c0_0 = arith.constant 0 : index
    %c0_1 = arith.constant 0 : index
    %c0_2 = arith.constant 0 : index
    %0 = vector.load %arg1[%c0, %c0_0, %c0_1, %c0_2] : memref<1x2x16x16xf32, #tpu.memory_space<vmem>>, vector<1x1x16x16xf32>
    %1 = vector.shape_cast %0 : vector<1x1x16x16xf32> to vector<16x16xf32>
    %c0_3 = arith.constant 0 : index
    %c1 = arith.constant 1 : index
    %c0_4 = arith.constant 0 : index
    %c0_5 = arith.constant 0 : index
    %2 = vector.load %arg1[%c0_3, %c1, %c0_4, %c0_5] : memref<1x2x16x16xf32, #tpu.memory_space<vmem>>, vector<1x1x16x16xf32>
    %3 = vector.shape_cast %2 : vector<1x1x16x16xf32> to vector<16x16xf32>
    %c15_i32 = arith.constant 15 : i32
    %4 = tpu.dynamic_rotate %1 by %c15_i32 dim 0 : vector<16x16xf32>, i32 -> vector<16x16xf32>
    %c1_i32 = arith.constant 1 : i32
    %5 = tpu.dynamic_rotate %1 by %c1_i32 dim 0 : vector<16x16xf32>, i32 -> vector<16x16xf32>
    %6 = tpu.iota {dimensions = array<i32: 0>} : vector<16x16xi32>
    %c0_i32 = arith.constant 0 : i32
    %7 = vector.broadcast %c0_i32 : i32 to vector<16x16xi32>
    %8 = arith.cmpi eq, %6, %7 : vector<16x16xi32>
    %9 = arith.subf %4, %1 : vector<16x16xf32>
    %c15_i32_6 = arith.constant 15 : i32
    %10 = vector.broadcast %c15_i32_6 : i32 to vector<16x16xi32>
    %11 = arith.cmpi eq, %6, %10 : vector<16x16xi32>
    %12 = arith.subf %1, %5 : vector<16x16xf32>
    %13 = arith.subf %4, %5 : vector<16x16xf32>
    %cst = arith.constant 5.000000e-01 : f32
    %14 = vector.broadcast %cst : f32 to vector<16x16xf32>
    %15 = arith.mulf %13, %14 : vector<16x16xf32>
    %16 = arith.select %11, %12, %15 : vector<16x16xi1>, vector<16x16xf32>
    %17 = arith.select %8, %9, %16 : vector<16x16xi1>, vector<16x16xf32>
    %c15_i32_7 = arith.constant 15 : i32
    %18 = tpu.dynamic_rotate %3 by %c15_i32_7 dim 1 : vector<16x16xf32>, i32 -> vector<16x16xf32>
    %c1_i32_8 = arith.constant 1 : i32
    %19 = tpu.dynamic_rotate %3 by %c1_i32_8 dim 1 : vector<16x16xf32>, i32 -> vector<16x16xf32>
    %20 = tpu.iota {dimensions = array<i32: 1>} : vector<16x16xi32>
    %c0_i32_9 = arith.constant 0 : i32
    %21 = vector.broadcast %c0_i32_9 : i32 to vector<16x16xi32>
    %22 = arith.cmpi eq, %20, %21 : vector<16x16xi32>
    %23 = arith.subf %18, %3 : vector<16x16xf32>
    %c15_i32_10 = arith.constant 15 : i32
    %24 = vector.broadcast %c15_i32_10 : i32 to vector<16x16xi32>
    %25 = arith.cmpi eq, %20, %24 : vector<16x16xi32>
    %26 = arith.subf %3, %19 : vector<16x16xf32>
    %27 = arith.subf %18, %19 : vector<16x16xf32>
    %cst_11 = arith.constant 5.000000e-01 : f32
    %28 = vector.broadcast %cst_11 : f32 to vector<16x16xf32>
    %29 = arith.mulf %27, %28 : vector<16x16xf32>
    %30 = arith.select %25, %26, %29 : vector<16x16xi1>, vector<16x16xf32>
    %31 = arith.select %22, %23, %30 : vector<16x16xi1>, vector<16x16xf32>
    %32 = arith.addf %17, %31 : vector<16x16xf32>
    %c0_12 = arith.constant 0 : index
    %c0_13 = arith.constant 0 : index
    %c0_14 = arith.constant 0 : index
    %c0_15 = arith.constant 0 : index
    %33 = vector.load %arg2[%c0_12, %c0_13, %c0_14, %c0_15] : memref<1x1x16x16xf32, #tpu.memory_space<vmem>>, vector<1x1x16x16xf32>
    %34 = vector.shape_cast %33 : vector<1x1x16x16xf32> to vector<16x16xf32>
    %35 = arith.mulf %32, %34 : vector<16x16xf32>
    %c0_16 = arith.constant 0 : index
    %36 = memref.load %arg5[%c0_16] : memref<4xf32, #tpu.memory_space<smem>>
    %c0_17 = arith.constant 0 : index
    %37 = memref.load %arg3[%c0_17] : memref<4xf32, #tpu.memory_space<smem>>
    %38 = vector.broadcast %37 : f32 to vector<16x16xf32>
    %39 = arith.mulf %35, %38 : vector<16x16xf32>
    %c0_18 = arith.constant 0 : index
    %40 = memref.load %arg4[%c0_18] : memref<4xf32, #tpu.memory_space<smem>>
    %41 = vector.broadcast %40 : f32 to vector<16x16xf32>
    %42 = arith.addf %39, %41 : vector<16x16xf32>
    %cst_19 = arith.constant 0.000000e+00 : f32
    %43 = vector.broadcast %cst_19 : f32 to vector<16x16xf32>
    %44 = arith.maximumf %42, %43 : vector<16x16xf32>
    %45 = vector.broadcast %36 : f32 to vector<16x16xf32>
    %46 = arith.mulf %45, %44 : vector<16x16xf32>
    %c0_20 = arith.constant 0 : index
    %47 = memref.load %arg6[%c0_20] : memref<1xf32, #tpu.memory_space<smem>>
    %48 = vector.broadcast %47 : f32 to vector<16x16xf32>
    %49 = arith.addf %46, %48 : vector<16x16xf32>
    %c1_21 = arith.constant 1 : index
    %50 = memref.load %arg5[%c1_21] : memref<4xf32, #tpu.memory_space<smem>>
    %c1_22 = arith.constant 1 : index
    %51 = memref.load %arg3[%c1_22] : memref<4xf32, #tpu.memory_space<smem>>
    %52 = vector.broadcast %51 : f32 to vector<16x16xf32>
    %53 = arith.mulf %35, %52 : vector<16x16xf32>
    %c1_23 = arith.constant 1 : index
    %54 = memref.load %arg4[%c1_23] : memref<4xf32, #tpu.memory_space<smem>>
    %55 = vector.broadcast %54 : f32 to vector<16x16xf32>
    %56 = arith.addf %53, %55 : vector<16x16xf32>
    %cst_24 = arith.constant 0.000000e+00 : f32
    %57 = vector.broadcast %cst_24 : f32 to vector<16x16xf32>
    %58 = arith.maximumf %56, %57 : vector<16x16xf32>
    %59 = vector.broadcast %50 : f32 to vector<16x16xf32>
    %60 = arith.mulf %59, %58 : vector<16x16xf32>
    %61 = arith.addf %49, %60 : vector<16x16xf32>
    %c2 = arith.constant 2 : index
    %62 = memref.load %arg5[%c2] : memref<4xf32, #tpu.memory_space<smem>>
    %c2_25 = arith.constant 2 : index
    %63 = memref.load %arg3[%c2_25] : memref<4xf32, #tpu.memory_space<smem>>
    %64 = vector.broadcast %63 : f32 to vector<16x16xf32>
    %65 = arith.mulf %35, %64 : vector<16x16xf32>
    %c2_26 = arith.constant 2 : index
    %66 = memref.load %arg4[%c2_26] : memref<4xf32, #tpu.memory_space<smem>>
    %67 = vector.broadcast %66 : f32 to vector<16x16xf32>
    %68 = arith.addf %65, %67 : vector<16x16xf32>
    %cst_27 = arith.constant 0.000000e+00 : f32
    %69 = vector.broadcast %cst_27 : f32 to vector<16x16xf32>
    %70 = arith.maximumf %68, %69 : vector<16x16xf32>
    %71 = vector.broadcast %62 : f32 to vector<16x16xf32>
    %72 = arith.mulf %71, %70 : vector<16x16xf32>
    %73 = arith.addf %61, %72 : vector<16x16xf32>
    %c3 = arith.constant 3 : index
    %74 = memref.load %arg5[%c3] : memref<4xf32, #tpu.memory_space<smem>>
    %c3_28 = arith.constant 3 : index
    %75 = memref.load %arg3[%c3_28] : memref<4xf32, #tpu.memory_space<smem>>
    %76 = vector.broadcast %75 : f32 to vector<16x16xf32>
    %77 = arith.mulf %35, %76 : vector<16x16xf32>
    %c3_29 = arith.constant 3 : index
    %78 = memref.load %arg4[%c3_29] : memref<4xf32, #tpu.memory_space<smem>>
    %79 = vector.broadcast %78 : f32 to vector<16x16xf32>
    %80 = arith.addf %77, %79 : vector<16x16xf32>
    %cst_30 = arith.constant 0.000000e+00 : f32
    %81 = vector.broadcast %cst_30 : f32 to vector<16x16xf32>
    %82 = arith.maximumf %80, %81 : vector<16x16xf32>
    %83 = vector.broadcast %74 : f32 to vector<16x16xf32>
    %84 = arith.mulf %83, %82 : vector<16x16xf32>
    %85 = arith.addf %73, %84 : vector<16x16xf32>
    %c0_31 = arith.constant 0 : index
    %c0_32 = arith.constant 0 : index
    %c0_33 = arith.constant 0 : index
    %c0_34 = arith.constant 0 : index
    %86 = vector.load %arg7[%c0_31, %c0_32, %c0_33, %c0_34] : memref<1x1x16x16xf32, #tpu.memory_space<vmem>>, vector<1x1x16x16xf32>
    %87 = vector.shape_cast %86 : vector<1x1x16x16xf32> to vector<16x16xf32>
    %88 = vector.shape_cast %85 : vector<16x16xf32> to vector<1x1x16x16xf32>
    tpu.vector_store %arg7[%c0_31, %c0_32, %c0_33, %c0_34], %88 {strides = array<i32>} : memref<1x1x16x16xf32, #tpu.memory_space<vmem>>, vector<1x1x16x16xf32>,
    return
  }
  func.func @transform_0(%arg0: i32) -> (i32, i32, i32, i32) {
    %c0_i32 = arith.constant 0 : i32
    %c0_i32_0 = arith.constant 0 : i32
    %c0_i32_1 = arith.constant 0 : i32
    %c0_i32_2 = arith.constant 0 : i32
    return %arg0, %c0_i32, %c0_i32_0, %c0_i32_1 : i32, i32, i32, i32
  }
  func.func @transform_1(%arg0: i32) -> (i32, i32, i32, i32) {
    %c0_i32 = arith.constant 0 : i32
    %c0_i32_0 = arith.constant 0 : i32
    %c0_i32_1 = arith.constant 0 : i32
    %c0_i32_2 = arith.constant 0 : i32
    return %arg0, %c0_i32, %c0_i32_0, %c0_i32_1 : i32, i32, i32, i32
  }
  func.func @transform_2(%arg0: i32) -> i32 {
    %c0_i32 = arith.constant 0 : i32
    %c0_i32_0 = arith.constant 0 : i32
    return %c0_i32 : i32
  }
  func.func @transform_3(%arg0: i32) -> i32 {
    %c0_i32 = arith.constant 0 : i32
    %c0_i32_0 = arith.constant 0 : i32
    return %c0_i32 : i32
  }
  func.func @transform_4(%arg0: i32) -> i32 {
    %c0_i32 = arith.constant 0 : i32
    %c0_i32_0 = arith.constant 0 : i32
    return %c0_i32 : i32
  }
  func.func @transform_5(%arg0: i32) -> i32 {
    %c0_i32 = arith.constant 0 : i32
    %c0_i32_0 = arith.constant 0 : i32
    return %c0_i32 : i32
  }
  func.func @transform_6(%arg0: i32) -> (i32, i32, i32, i32) {
    %c0_i32 = arith.constant 0 : i32
    %c0_i32_0 = arith.constant 0 : i32
    %c0_i32_1 = arith.constant 0 : i32
    %c0_i32_2 = arith.constant 0 : i32
    return %arg0, %c0_i32, %c0_i32_0, %c0_i32_1 : i32, i32, i32, i32
  }
}

</mosaic_0001>

<bundles_post_ra>
// kernel: mpp_forward.3
= control target key start
LH: loop header
LB: loop body
LE: loop exit
PB: predicated region body
PF: predicated region fallthrough
CT: control target
= control target key end

     0   :  { %s1119_s0 = inlined_call_operand.vmem [shape: f32[2,2,16,16], index: 0, kind: input, shape index: {}]   ;;  %s1120_s1 = inlined_call_operand.vmem [shape: f32[2,1,16,16], index: 1, kind: input, shape index: {}]   ;;  %s1121_s2 = inlined_call_operand.vmem [shape: f32[4], index: 2, kind: input, shape index: {}]   ;;  %s1122_s3 = inlined_call_operand.vmem [shape: f32[4], index: 3, kind: input, shape index: {}]   ;;  %s1123_s4 = inlined_call_operand.vmem [shape: f32[4], index: 4, kind: input, shape index: {}]   ;;  %s1124_s5 = inlined_call_operand.<no memory space> [shape: f32[1], index: 5, kind: input, shape index: {}]   ;;  %s1125_s6 = inlined_call_operand.hbm [shape: f32[2,1,16,16], index: 6, kind: output, shape index: {}]  }
   0x1   :  { %11 = sst [smem:[#allocation2]] %s1124_s5 }
   0x2   :  { %12 = vsyncpa [#allocation5], 0 }
   0x3   :  { %13 = vsyncpa [#allocation7], 0 }
   0x4   :  { %14 = vsyncpa [#allocation4], 0 }
   0x5   :  { %16 = vsyncpa [#allocation4 + $0x1], 0  ;;  %s882_s23 = smov 0   ;;  %s884_s24 = smov 0  }
   0x6   :  { %s886_s25 = smov 0   ;;  %s888_s26 = smov 0  }
   0x7 LB: > { %s903_s5 = sadd.s32 4294967295, %s831_s26   ;;  %s605_s27 = sadd.s32 4294967294, %s831_s26   ;;  %s831_s26 = sphi %s888_s26, %s1143_s26   ;;  %s827_s25 = sphi %s886_s25, %s1142_s25   ;;  %s823_s24 = sphi %s884_s24, %s1141_s24   ;;  %s819_s23 = sphi %s882_s23, %s1140_s23  }
   0x8   : > { %s907_s28 = sadd.s32 1, %s831_s26   ;;  %s165_s29 = sadd.s32 1, %s827_s25 }
   0x9   : > { %s162_s30 = ssub.s32 %s831_s26, %s907_s28  ;;  %p175_p0 = scmp.ne.s32.totalorder %s827_s25, %s823_s24 }
   0xa   : > { %p163_p1 = scmp.eq.s32.totalorder %s162_s30, 0  ;;  %p176_p2 = scmp.eq.s32.totalorder %s903_s5, 1 }
   0xb   : > { %p181_p3 = scmp.ne.s32.totalorder %s823_s24, %s819_s23  ;;  %p182_p4 = scmp.eq.s32.totalorder %s605_s27, 1 }
   0xc   : > { %s918_s7 = scalar_select %p163_p1, %s827_s25, %s165_s29  }
   0xd   : > { %p920_p5 = por %p176_p2, %p175_p0  ;;  %p924_p6 = por %p182_p4, %p181_p3 }
   0xe   : > { %p606_p7 = scmp.ge.s32.totalorder %s831_s26, 1  ;;  %p189_p8 = scmp.lt.s32.totalorder %s831_s26, 3 }
   0xf   : > { %s1129_s8 = scalar_select %p920_p5, 1, 0 }
  0x10   : > { %s1130_s9 = scalar_select %p924_p6, 1, 0 }
  0x11   : > { %p1126_p9 = scmp.eq.s32.totalorder %s903_s5, 0  ;;  %p931_p10 = pnand %p606_p7, %p189_p8 }
  0x12   : > { %s213_s13 = sshll.u32 %s1122_s3, 4  ;;  %s202_s16 = sshll.u32 %s1121_s2, 4  ;;  %s214_s13 = int_to_ptr.vmem [resolvable:$true] %s213_s13  ;;  %s203_s16 = int_to_ptr.vmem [resolvable:$true] %s202_s16 }
  0x13   : > { %s1131_s10 = scalar_select %p931_p10, 1, 0 }
  0x14   : > { %p653_p11 = pneg %p931_p10  ;;  %s224_s20 = sshll.u32 %s1123_s4, 4  ;;  %s952_s20 = int_to_ptr.vmem [resolvable:$true] %s224_s20 }
  0x15   : > { %s716_s21 = scalar_lea.vmem %s214_s13, 16  ;;  %p724_p3 = scmp.lt.s32.totalorder %s214_s13, %s214_s13 }
  0x16   : > { %p945_p12 = pnand %p1126_p9, %p653_p11  ;;  %p717_p13 = scmp.ne.s32.totalorder %s214_s13, %s716_s21 }
  0x17   : > { %p725_p4 = scmp.lt.s32.totalorder %s716_s21, %s716_s21 }
  0x18   : > { %p718_p0 = pneg %p945_p12 }
  0x19   : > { %p726_p7 = por %p725_p4, %p724_p3 }
  0x1a   : > { %p719_p1 = pnand %p718_p0, %p717_p13 }
  0x1c   : > { %p720_p2 = pneg %p719_p1 }
  0x1e   : > { %p727_p8 = pnand %p726_p7, %p720_p2 }
  0x20   : > { %730 = shalt.err (!%p727_p8)
}
  0x21   : > { %s833_s22 = smov [#allocation6]   ;;  %s731_s27 = scalar_lea.vmem %s203_s16, 16 }
  0x22   : > { %659 = dma.vmem_to_smem (!%p945_p12), %s214_s13, 16, %s833_s22, [#allocation7]  }
  0x23   : > { %p732_p11 = scmp.ne.s32.totalorder %s203_s16, %s731_s27  ;;  %p739_p5 = scmp.lt.s32.totalorder %s203_s16, %s203_s16 }
  0x24   : > { %p740_p10 = scmp.lt.s32.totalorder %s731_s27, %s731_s27 }
  0x25   : > { %p734_p9 = pnand %p732_p11, %p718_p0 }
  0x26   : > { %p741_p13 = por %p740_p10, %p739_p5 }
  0x27   : > { %p735_p6 = pneg %p734_p9 }
  0x29   : > { %p742_p1 = pnand %p741_p13, %p735_p6 }
  0x2b   : > { %745 = shalt.err (!%p742_p1)
}
  0x2c   : > { %s834_s29 = smov [#allocation3]   ;;  %s746_s30 = scalar_lea.vmem %s952_s20, 16 }
  0x2d   : > { %656 = dma.vmem_to_smem (!%p945_p12), %s203_s16, 16, %s834_s29, [#allocation5]  }
  0x2e   : > { %p747_p2 = scmp.ne.s32.totalorder %s952_s20, %s746_s30  ;;  %p754_p9 = scmp.lt.s32.totalorder %s952_s20, %s952_s20 }
  0x2f   : > { %p755_p7 = scmp.lt.s32.totalorder %s746_s30, %s746_s30 }
  0x30   : > { %p749_p3 = pnand %p747_p2, %p718_p0 }
  0x31   : > { %p756_p5 = por %p755_p7, %p754_p9 }
  0x32   : > { %p750_p4 = pneg %p749_p3 }
  0x34   : > { %p757_p6 = pnand %p756_p5, %p750_p4 }
  0x36   : > { %760 = shalt.err (!%p757_p6)
}
  0x37   : > { %s835_s11 = smov [#allocation8]   ;;  %p1133_p10 = scmp.ne.s32.totalorder %s1131_s10, 0 }
  0x38   : > { %662 = dma.vmem_to_smem (!%p945_p12), %s952_s20, 16, %s835_s11, [#allocation7]  }
  0x39   : > { %256 = sbr.rel (%p1133_p10) target bundleno = 589 (0x24d), region = 44  ;;  %p1134_p8 = scmp.eq.s32.totalorder (!%p1133_p10), %s903_s5, 0 }
  0x40   : > { %806 = dma.done.wait (%p1134_p8), [#allocation5], 16   ;;  %p1135_p0 = pmov %p1134_p8 }
  0x42   : > { %808 = vsyncadd (%p1135_p0), [#allocation5], 4294967280  ;;  %p1136_p11 = pmov %p1135_p0 }
  0x43   : > { %p1137_p13 = pmov %p1135_p0 }
  0x44   : > { %810 = dma.done.wait (%p1136_p11), [#allocation7], 32  }
  0x45   : > { %812 = vsyncadd (%p1137_p13), [#allocation7], 4294967264 }
  0x46   : > { %270 = sfence }
  0x47   : > { %p300_p1 = scmp.lt.s32.totalorder %s903_s5, 1  ;;  %s836_s16 = smov 16   ;;  %vm344_vm0 = vcmask 1047680   ;;  %v317_v20 = vlaneseq  ;;  %vm483_vm7 = vcmask 130048  }
  0x48   : > { %s837_s17 = smov 114   ;;  %s838_s18 = smov 1  }
  0x49   : > { %s988_s12 = scalar_select %p300_p1, %s903_s5, 1  ;;  %v318_v22 = vshrl.u32 %v317_v20, 7  ;;  %v358_v32 = vand.u32 127, %v317_v20 }
  0x4a   : > { %s839_s19 = smov 113   ;;  %s840_s20 = smov 127  }
  0x4b   : > { %s636_s10 = sshll.u32 %s988_s12, 5  ;;  %vm319_vm1 = vcmp.lt.s32.totalorder %v318_v22, 7  ;;  %vm324_vm2 = vcmp.lt.s32.totalorder %v318_v22, 1  ;;  %s1012_s21 = sld [smem:[#allocation3]]  ;;  %vm328_vm3 = vcmp.eq.s32.totalorder %v318_v22, 0  ;;  %vm370_vm4 = vcmp.eq.s32.totalorder %v358_v32, 15 }
  0x4c   : > { %s994_s15 = scalar_lea.vmem %s1119_s0, %s636_s10  ;;  %s1014_s22 = sld [smem:[#allocation3 + $0x1]]  ;;  %v327_v40 = vadd.s32 8, %v318_v22  ;;  %vm359_vm5 = vcmp.eq.s32.totalorder %v358_v32, 0 }
  0x4d   : > { %v997_v0 = vld [vmem:[%s994_s15 + $0x10] sm:$0xff]  ;;  %v1001_v1 = vld [vmem:[%s994_s15 + $0x18] sm:$0xff]  ;;  %v311_v21 = vld [vmem:[%s994_s15 + $0x8] sm:$0xff]  ;;  %s1016_s27 = sld [smem:[#allocation3 + $0x2]]  ;;  %s637_s29 = sshll.u32 %s988_s12, 4 }
  0x4e   : > { %345 = vrot.lane.b32.xlu0 %v997_v0, %s836_s16  ;;  %v310_v23 = vld [vmem:[%s994_s15] sm:$0xff]  ;;  %v316_v25 = vrot.slane %v311_v21, 1  ;;  %v323_v27 = vrot.slane %v311_v21, 7  ;;  %s1019_s30 = sld [smem:[#allocation3 + $0x3]]  ;;  %s1021_s11 = sld [smem:[#allocation6]]  ;;  %vm333_vm6 = vcmp.eq.s32.totalorder %v327_v40, 15 }
  0x4f   : > { %v315_v24 = vrot.slane %v310_v23, 1  ;;  %v322_v26 = vrot.slane %v310_v23, 7  ;;  %s1023_s10 = sld [smem:[#allocation6 + $0x1]]  ;;  %s1025_s13 = sld [smem:[#allocation6 + $0x2]] }
  0x50   : > { %s1031_s15 = scalar_lea.vmem %s1120_s1, %s637_s29  ;;  %s638_s29 = sshll.u32 %s903_s5, 8 }
  0x51   : > { %v320_v28 = vsel %vm319_vm1, %v315_v24, %v316_v25  ;;  %v326_v29 = vsel %vm324_vm2, %v323_v27, %v322_v26  ;;  %v321_v33 = vsel %vm319_vm1, %v316_v25, %v315_v24  ;;  %v325_v34 = vsel %vm324_vm2, %v322_v26, %v323_v27  ;;  %v413_v48 = vld [vmem:[%s1031_s15] sm:$0xff]  ;;  %s1072_s14 = scalar_lea.hbm %s1125_s6, %s638_s29  ;;  %p1138_p2 = scmp.ne.s32.totalorder %s1129_s8, 0 }
  0x52   : > { %348 = vrot.lane.b32.xlu0 %v1001_v1, %s836_s16  ;;  %v336_v30 = vsub.f32 %v320_v28, %v326_v29  ;;  %v330_v35 = vsub.f32 %v320_v28, %v310_v23  ;;  %v337_v39 = vsub.f32 %v321_v33, %v325_v34  ;;  %v335_v46 = vsub.f32 %v311_v21, %v325_v34 }
  0x53   : > { %v419_v52 = vstv %s1012_s21  ;;  %v437_v53 = vstv %s1014_s22  ;;  %v453_v54 = vstv %s1016_s27  ;;  %s1057_s21 = sld [smem:[#allocation8 + $0x3]]  ;;  %s297_s22 = sand.u32 1, %s823_s24  }
  0x54   : > { %v338_v36 = vmul.f32 0.5, %v336_v30  ;;  %v339_v47 = vmul.f32 0.5, %v337_v39  ;;  %v469_v55 = vstv %s1019_s30  ;;  %v423_v60 = vstv %s1021_s11  ;;  %s615_s27 = sshll.u32 %s297_s22, 4  ;;  %s1078_s12 = scalar_lea.sflag [#allocation4], %s297_s22 }
  0x55   : > { %v441_v61 = vstv %s1023_s10  ;;  %v457_v62 = vstv %s1025_s13  ;;  %s299_s30 = scalar_lea.vmem [#allocation9], %s615_s27 }
  0x56   : > { %v342_v42 = vsel %vm328_vm3, %v330_v35, %v338_v36  ;;  %v341_v59 = vsel %vm333_vm6, %v335_v46, %v339_v47  ;;  %s500_s11 = sshll.u32 %s299_s30, 4  ;;  %s1074_s11 = int_to_ptr.vmem [resolvable:$true] %s500_s11 }
  0x57   : > { %s761_s5 = scalar_lea.vmem %s1074_s11, 256 }
  0x58   : > { %p762_p12 = scmp.ne.s32.totalorder %s1074_s11, %s761_s5 }
  0x59   : > { %v478_v30 = vstv %s1057_s21 }
  0x5a   : > { %p763_p3 = pnand %p762_p12, %p1138_p2 }
  0x5c   : > { %p764_p4 = pneg %p763_p3 }
  0xc0   : > { %v346_v2 = vpop.permute.xlu0 %345 }
  0xc1   : > { %v347_v3 = vsel %vm344_vm0, %v346_v2, %v997_v0 }
  0xc2   : > { %351 = vrot.lane.b32.xlu1 %v347_v3, %s836_s16 }
  0xc4   : > { %v349_v4 = vpop.permute.xlu0 %348 }
  0xc5   : > { %v350_v5 = vsel %vm344_vm0, %v349_v4, %v1001_v1  ;;  %v414_v4 = vld [vmem:[%s1031_s15 + $0x8] sm:$0xff]  ;;  %s841_s15 = smov [#allocation9]  }
  0xc6   : > { %353 = vrot.lane.b32.xlu1 %v350_v5, %s836_s16  ;;  %s1033_s16 = sld [smem:[#allocation6 + $0x3]] }
  0xcc   : > { %v473_v5 = vstv %s1033_s16  ;;  %s765_s16 = sshll.u32 %s841_s15, 4  ;;  %s766_s16 = int_to_ptr.vmem [resolvable:$false] %s765_s16 }
  0xcd   : > { %p768_p9 = scmp.lt.s32.totalorder %s1074_s11, %s766_s16 }
 0x134   : > { %v352_v6 = vpop.permute.xlu1 %351 }
 0x135   : > { %v355_v7 = vsel %vm344_vm0, %v352_v6, %v997_v0 }
 0x136   : > { %381 = vrot.lane.b32.xlu0 %v355_v7, %s837_s17 }
 0x138   : > { %v354_v8 = vpop.permute.xlu1 %353 }
 0x139   : > { %v356_v9 = vsel %vm344_vm0, %v354_v8, %v1001_v1 }
 0x13a   : > { %362 = vrot.lane.b32.xlu0 %v997_v0, %s838_s18  ;;  %383 = vrot.lane.b32.xlu1 %v356_v9, %s837_s17  ;;  %s1037_s17 = sld [smem:[#allocation8]] }
 0x13e   : > { %373 = vrot.lane.b32.xlu0 %v355_v7, %s839_s19  ;;  %364 = vrot.lane.b32.xlu1 %v1001_v1, %s838_s18  ;;  %s1039_s18 = sld [smem:[#allocation2]] }
 0x142   : > { %375 = vrot.lane.b32.xlu1 %v356_v9, %s839_s19  ;;  %s1043_s19 = sld [smem:[#allocation8 + $0x1]] }
 0x1a8   : > { %v382_v10 = vpop.permute.xlu0 %381 }
 0x1a9   : > { %v387_v11 = vsub.f32 %v355_v7, %v382_v10  ;;  %v428_v10 = vstv %s1037_s17  ;;  %s767_s17 = scalar_lea.vmem %s766_s16, 512 }
 0x1aa   : > { %p769_p7 = scmp.lt.s32.totalorder %s767_s17, %s761_s5 }
 0x1ab   : > { %v389_v12 = vmul.f32 0.5, %v387_v11  ;;  %v432_v11 = vstv %s1039_s18 }
 0x1ac   : > { %v384_v13 = vpop.permute.xlu1 %383  ;;  %v363_v14 = vpop.permute.xlu0 %362  ;;  %p770_p5 = por %p769_p7, %p768_p9 }
 0x1ad   : > { %v388_v15 = vsub.f32 %v356_v9, %v384_v13  ;;  %393 = vrot.lane.b32.xlu0 %v389_v12, %s840_s20  ;;  %v368_v17 = vsub.f32 %v355_v7, %v363_v14  ;;  %v446_v13 = vstv %s1043_s19 }
 0x1ae   : > { %p771_p6 = pnand %p770_p5, %p764_p4 }
 0x1af   : > { %v390_v16 = vmul.f32 0.5, %v388_v15 }
 0x1b0   : > { %v365_v18 = vpop.permute.xlu1 %364  ;;  %v374_v31 = vpop.permute.xlu0 %373 }
 0x1b1   : > { %395 = vrot.lane.b32.xlu1 %v390_v16, %s840_s20  ;;  %403 = vrot.lane.b32.xlu0 %v368_v17, %s840_s20  ;;  %v369_v19 = vsub.f32 %v356_v9, %v365_v18  ;;  %v379_v41 = vsub.f32 %v997_v0, %v374_v31 }
 0x1b4   : > { %v376_v37 = vpop.permute.xlu1 %375 }
 0x1b5   : > { %405 = vrot.lane.b32.xlu1 %v369_v19, %s840_s20  ;;  %v380_v50 = vsub.f32 %v1001_v1, %v376_v37  ;;  %s1052_s20 = sld [smem:[#allocation8 + $0x2]] }
 0x1bb   : > { %v462_v23 = vstv %s1052_s20 }
 0x21f   : > { %v394_v38 = vpop.permute.xlu0 %393 }
 0x220   : > { %v399_v43 = vsel %vm370_vm4, %v379_v41, %v394_v38 }
 0x223   : > { %v396_v44 = vpop.permute.xlu1 %395  ;;  %v404_v45 = vpop.permute.xlu0 %403 }
 0x224   : > { %v409_v49 = vsel %vm359_vm5, %v404_v45, %v399_v43  ;;  %v400_v56 = vsel %vm370_vm4, %v380_v50, %v396_v44 }
 0x225   : > { %v411_v51 = vadd.f32 %v409_v49, %v342_v42 }
 0x227   : > { %v415_v57 = vmul.f32 %v413_v48, %v411_v51  ;;  %v406_v58 = vpop.permute.xlu1 %405 }
 0x228   : > { %v410_v63 = vsel %vm359_vm5, %v406_v58, %v400_v56 }
 0x229   : > { %v420_v0 = vmul.f32 %v419_v52, %v415_v57  ;;  %v438_v1 = vmul.f32 %v437_v53, %v415_v57  ;;  %v454_v2 = vmul.f32 %v453_v54, %v415_v57  ;;  %v470_v3 = vmul.f32 %v469_v55, %v415_v57 }
 0x22a   : > { %v412_v6 = vadd.f32 %v410_v63, %v341_v59 }
 0x22b   : > { %v424_v7 = vadd.f32 %v423_v60, %v420_v0  ;;  %v442_v8 = vadd.f32 %v441_v61, %v438_v1  ;;  %v458_v9 = vadd.f32 %v457_v62, %v454_v2  ;;  %v474_v16 = vadd.f32 %v473_v5, %v470_v3 }
 0x22c   : > { %v416_v12 = vmul.f32 %v414_v4, %v412_v6 }
 0x22d   : > { %v426_v14 = vmax.f32 %v424_v7, 0.0  ;;  %v444_v15 = vmax.f32 %v442_v8, 0.0  ;;  %v460_v22 = vmax.f32 %v458_v9, 0.0  ;;  %v476_v29 = vmax.f32 %v474_v16, 0.0 }
 0x22e   : > { %v421_v17 = vmul.f32 %v419_v52, %v416_v12  ;;  %v439_v18 = vmul.f32 %v437_v53, %v416_v12  ;;  %v455_v19 = vmul.f32 %v453_v54, %v416_v12  ;;  %v471_v20 = vmul.f32 %v469_v55, %v416_v12 }
 0x22f   : > { %v429_v21 = vmul.f32 %v428_v10, %v426_v14  ;;  %v447_v28 = vmul.f32 %v446_v13, %v444_v15  ;;  %v463_v35 = vmul.f32 %v462_v23, %v460_v22  ;;  %v479_v38 = vmul.f32 %v478_v30, %v476_v29 }
 0x230   : > { %v425_v24 = vadd.f32 %v423_v60, %v421_v17  ;;  %v443_v25 = vadd.f32 %v441_v61, %v439_v18  ;;  %v459_v26 = vadd.f32 %v457_v62, %v455_v19  ;;  %v475_v33 = vadd.f32 %v473_v5, %v471_v20 }
 0x231   : > { %v433_v27 = vadd.f32 %v432_v11, %v429_v21 }
 0x232   : > { %v427_v31 = vmax.f32 %v425_v24, 0.0  ;;  %v445_v32 = vmax.f32 %v443_v25, 0.0  ;;  %v461_v37 = vmax.f32 %v459_v26, 0.0  ;;  %v477_v42 = vmax.f32 %v475_v33, 0.0 }
 0x233   : > { %v449_v34 = vadd.f32 %v447_v28, %v433_v27 }
 0x234   : > { %v430_v36 = vmul.f32 %v428_v10, %v427_v31  ;;  %v448_v41 = vmul.f32 %v446_v13, %v445_v32  ;;  %v464_v45 = vmul.f32 %v462_v23, %v461_v37  ;;  %v480_v46 = vmul.f32 %v478_v30, %v477_v42 }
 0x235   : > { %v465_v39 = vadd.f32 %v463_v35, %v449_v34 }
 0x236   : > { %v434_v40 = vadd.f32 %v432_v11, %v430_v36 }
 0x237   : > { %v481_v43 = vadd.f32 %v479_v38, %v465_v39 }
 0x238   : > { %v450_v44 = vadd.f32 %v448_v41, %v434_v40 }
 0x239   : > { %484 = vst.msk [vmem:[%s299_s30] sm:$0xff] %vm483_vm7, %v481_v43 }
 0x23a   : > { %v466_v47 = vadd.f32 %v464_v45, %v450_v44 }
 0x23c   : > { %v482_v48 = vadd.f32 %v480_v46, %v466_v47 }
 0x23e   : > { %485 = vst.msk [vmem:[%s299_s30 + $0x8] sm:$0xff] %vm483_vm7, %v482_v48 }
 0x23f   : > { %774 = shalt.err (!%p771_p6)
}
 0x240   : > { %s775_s18 = scalar_lea.hbm %s1072_s14, 256  ;;  %s779_s21 = scalar_lea.hbm %s1125_s6, 512 }
 0x241   : > { %p776_p10 = scmp.ne.s32.totalorder %s1072_s14, %s775_s18  ;;  %p780_p11 = scmp.lt.u32.totalorder %s1072_s14, %s1125_s6 }
 0x242   : > { %p781_p13 = scmp.lt.u32.totalorder %s779_s21, %s775_s18  ;;  %p783_p12 = scmp.lt.u32.totalorder %s775_s18, %s1072_s14 }
 0x243   : > { %p777_p8 = pnand %p776_p10, %p1138_p2 }
 0x244   : > { %p782_p1 = por %p781_p13, %p780_p11 }
 0x245   : > { %p778_p0 = pneg %p777_p8 }
 0x246   : > { %p784_p3 = por %p783_p12, %p782_p1 }
 0x248   : > { %p785_p4 = pnand %p784_p3, %p778_p0 }
 0x24a   : > { %788 = shalt.err (!%p785_p4)
}
 0x24b   : > { %s842_s29 = smov 128   ;;  %s843_s30 = smov 8  }
 0x24c   : > { %651 = dma.vmem_to_hbm [thread:$0]  (%p1138_p2), %s1074_s11, 256, %s1072_s14, %s1078_s12, %s842_s29, %s842_s29, %s843_s30  }
 0x24d PF: > { %p673_p9 = scmp.ge.s32.totalorder %s831_s26, 2  ;;  %s515_s10 = sand.u32 1, %s819_s23  }
 0x24e   : > { %p1139_p7 = scmp.ne.s32.totalorder %s1130_s9, 0  ;;  %s516_s13 = scalar_lea.sflag [#allocation4], %s515_s10 }
 0x250   : > { %p664_p5 = pnand %p673_p9, %p1139_p7 }
 0x252   : > { %814 = dma.done.wait (!%p664_p5), %s516_s13, 256  }
 0x253   : > { %816 = vsyncadd (!%p664_p5), %s516_s13, 4294967040  ;;  %p19_p6 = scmp.ge.s32.totalorder %s907_s28, 4   ;;  %s1140_s23 = smov %s823_s24 }
 0x254   : > { %s1141_s24 = smov %s827_s25  ;;  %s1142_s25 = smov %s918_s7 }
 0x255   : > { %s1143_s26 = smov %s907_s28  ;;  %21 = sbr.rel (!%p19_p6) target bundleno = 7 (0x7), region = 96 }
 0x25c   :  { %521 = vsyncpa [#allocation4], 1 }
 0x25d   :  { %523 = vsyncpa [#allocation4 + $0x1], 1 }
 0x25e   :  { %524 = vsyncpa [#allocation5], 1 }
 0x25f   :  { %526 = vsyncpa [#allocation5 + $0x1], 1 }
 0x260   :  { %527 = vsyncpa [#allocation7], 1 }

// kernel: mpp_forward.2
= control target key start
LH: loop header
LB: loop body
LE: loop exit
PB: predicated region body
PF: predicated region fallthrough
CT: control target
= control target key end

     0   :  { %s1315_s17 = smov 0   ;;  %s1317_s18 = smov 0   ;;  %s1435_s0 = inlined_call_operand.vmem [shape: f32[2,3,256], index: 0, kind: input, shape index: {}]   ;;  %s1436_s1 = inlined_call_operand.vmem [shape: f32[16,3], index: 1, kind: input, shape index: {}]   ;;  %s1437_s2 = inlined_call_operand.vmem [shape: f32[16,1], index: 2, kind: input, shape index: {}]   ;;  %s1438_s3 = inlined_call_operand.vmem [shape: bf16[16,16], index: 3, kind: input, shape index: {}]   ;;  %s1439_s4 = inlined_call_operand.vmem [shape: f32[16,1], index: 4, kind: input, shape index: {}]   ;;  %s1440_s5 = inlined_call_operand.vmem [shape: bf16[32,16], index: 5, kind: input, shape index: {}]   ;;  %s1441_s6 = inlined_call_operand.vmem [shape: f32[32,1], index: 6, kind: input, shape index: {}]   ;;  %s1442_s7 = inlined_call_operand.vmem [shape: f32[2,2,256], index: 7, kind: output, shape index: {0}]   ;;  %s1443_s8 = inlined_call_operand.vmem [shape: f32[2,1,256], index: 8, kind: output, shape index: {1}]   ;;  %s1444_s9 = inlined_call_operand.vmem [shape: f32[2,8,256], index: 9, kind: output, shape index: {2}]   ;;  %s1445_s10 = inlined_call_operand.vmem [shape: f32[2,8,256], index: 10, kind: output, shape index: {3}]   ;;  %s1446_s11 = inlined_call_operand.vmem [shape: f32[2,8,256], index: 11, kind: output, shape index: {4}]  }
   0x1   :  { %s1319_s19 = smov 0  }
   0x2 LB: > { %s34_s20 = sadd.s32 1, %s1245_s18  ;;  %p1152_p0 = scmp.ge.s32.totalorder %s1249_s19, 1  ;;  %s1249_s19 = sphi %s1319_s19, %s22_s19   ;;  %s1245_s18 = sphi %s1317_s18, %s1448_s18   ;;  %s1241_s17 = sphi %s1315_s17, %s1447_s17  }
   0x3   : > { %p36_p1 = scmp.ge.s32.totalorder %s34_s20, 2  ;;  %p375_p2 = scmp.lt.s32.totalorder %s1249_s19, 3 }
   0x5   : > { %s1450_s20 = smov (%p36_p1, %s34_s20), 0  ;;  %p376_p3 = pnand %p1152_p0, %p375_p2 }
   0x6   : > { %v554_v0 = vld [vmem:[%s1437_s2] sm:$0xff] (!%p376_p3)  ;;  %v1251_v2 = vmov (!%p376_p3), 0   ;;  %v555_v3 = vld [vmem:[%s1437_s2 + $0x8] sm:$0xff] (!%p376_p3)  ;;  %v1252_v5 = vmov (!%p376_p3), 1   ;;  %v1253_v6 = vmov (!%p376_p3), 2   ;;  %v722_v10 = vld [vmem:[%s1441_s6 + $0x10] sm:$0xff] (!%p376_p3)  ;;  %v532_v11 = vlaneseq (!%p376_p3) }
   0x7   : > { %379 = sbr.rel (%p376_p3) target bundleno = 637 (0x27d), region = 48  ;;  %v519_v1 = vld [vmem:[%s1436_s1] sm:$0xff] (!%p376_p3)  ;;  %1209 = vset.pattern.permute.xlu1 (!%p376_p3), %v1251_v2  ;;  %1208 = vset.pattern.permute.xlu0 (!%p376_p3), %v1251_v2  ;;  %v520_v4 = vld [vmem:[%s1436_s1 + $0x8] sm:$0xff] (!%p376_p3)  ;;  %p459_p4 = scmp.lt.s32.totalorder (!%p376_p3), %s1241_s17, 1  ;;  %vm663_vm0 = vcmask (!%p376_p3), 130048  }
   0x8   : > { %558 = vperm.xlu1 (!%p376_p3), %1209, %v554_v0   ;;  %523 = vperm.xlu0 (!%p376_p3), %1208, %v519_v1   ;;  %v646_v7 = vld [vmem:[%s1439_s4] sm:$0xff] (!%p376_p3)  ;;  %v647_v8 = vld [vmem:[%s1439_s4 + $0x8] sm:$0xff] (!%p376_p3)  ;;  %v1371_v12 = vshrl.u32 (!%p376_p3), %v532_v11, 7  ;;  %vm858_vm1 = vcmp.lt.s32.totalorder (!%p376_p3), %v532_v11, 256 }
   0x9   : > { %699 = vmatprep.mubr.bf16.mxu0 (!%p376_p3), %v1251_v2  ;;  %792 = vmatprep.mubr.bf16.mxu1 (!%p376_p3), %v1251_v2  ;;  %v721_v9 = vld [vmem:[%s1441_s6 + $0x8] sm:$0xff] (!%p376_p3) }
   0xa   : > { %v534_v13 = vsub.s32 (!%p376_p3), 0, %v1371_v12  ;;  %v538_v14 = vsub.s32 (!%p376_p3), 4, %v1371_v12  ;;  %v580_v16 = vsub.s32 (!%p376_p3), 1, %v1371_v12  ;;  %v584_v17 = vsub.s32 (!%p376_p3), 5, %v1371_v12 }
   0xb   : > { %v614_v24 = vsub.s32 (!%p376_p3), 2, %v1371_v12  ;;  %v618_v25 = vsub.s32 (!%p376_p3), 6, %v1371_v12 }
   0xc   : > { %563 = vperm.xlu1 (!%p376_p3), %1209, %v555_v3   ;;  %528 = vperm.xlu0 (!%p376_p3), %1208, %v520_v4  }
   0xe   : > { %s1452_s17 = smov (!%p459_p4, %s1241_s17), 1 }
   0xf   : > { %s1175_s22 = sshll.u32 %s1452_s17, 3  ;;  %s1402_s21 = sshll.u32 %s1452_s17, 4 }
  0x10   : > { %1211 = vset.pattern.permute.xlu1 %v1252_v5  ;;  %1210 = vset.pattern.permute.xlu0 %v1252_v5  ;;  %s466_s25 = scalar_lea.vmem %s1435_s0, %s1175_s22  ;;  %s1176_s22 = sshll.u32 %s1452_s17, 2 }
  0x11   : > { %575 = vperm.xlu1 %1211, %v520_v4   ;;  %571 = vperm.xlu0 %1210, %v519_v1   ;;  %v518_v15 = vld [vmem:[%s466_s25] sm:$0x77]  ;;  %s495_s25 = scalar_lea.vmem %s1444_s9, %s1402_s21  ;;  %s476_s28 = scalar_lea.vmem %s1442_s7, %s1176_s22 }
  0x12   : > { %v535_v20 = vrot.slane %v518_v15, %v534_v13  ;;  %v539_v21 = vrot.slane %v518_v15, %v538_v14  ;;  %v581_v22 = vrot.slane %v518_v15, %v580_v16  ;;  %v585_v23 = vrot.slane %v518_v15, %v584_v17  ;;  %s505_s12 = scalar_lea.vmem %s1445_s10, %s1402_s21  ;;  %s515_s15 = scalar_lea.vmem %s1446_s11, %s1402_s21 }
  0x13   : > { %v615_v32 = vrot.slane %v518_v15, %v614_v24  ;;  %v619_v33 = vrot.slane %v518_v15, %v618_v25  ;;  %s1157_s16 = sshll.u32 %s1452_s17, 1 }
  0x14   : > { %v545_v26 = vrot.slane %v535_v20, %v534_v13  ;;  %v549_v27 = vrot.slane %v539_v21, %v534_v13  ;;  %v591_v30 = vrot.slane %v581_v22, %v580_v16  ;;  %v595_v31 = vrot.slane %v585_v23, %v580_v16  ;;  %s485_s23 = scalar_lea.vmem %s1443_s8, %s1157_s16 }
  0x15   : > { %1212 = vset.pattern.permute.xlu1 %v1253_v6  ;;  %1213 = vset.pattern.permute.xlu0 %v1253_v6  ;;  %v625_v44 = vrot.slane %v615_v32, %v614_v24  ;;  %v629_v45 = vrot.slane %v619_v33, %v614_v24 }
  0x16   : > { %605 = vperm.xlu1 %1212, %v519_v1   ;;  %609 = vperm.xlu0 %1213, %v520_v4  }
  0x1a   : > { %1214 = vset.pattern.permute.xlu1 %v1251_v2  ;;  %1215 = vset.pattern.permute.xlu0 %v1251_v2 }
  0x1b   : > { %650 = vperm.xlu1 %1214, %v646_v7   ;;  %v1216_v7 = vld [vmem:[%s1438_s3] sm:$0xff]  }
  0x1f   : > { %655 = vperm.xlu1 %1214, %v647_v8   ;;  %v720_v8 = vld [vmem:[%s1441_s6] sm:$0xff] }
  0x20   : > { %726 = vperm.xlu0 %1215, %v720_v8  }
  0x23   : > { %731 = vperm.xlu1 %1214, %v721_v9   ;;  %v723_v9 = vld [vmem:[%s1441_s6 + $0x18] sm:$0xff] }
  0x24   : > { %741 = vperm.xlu0 %1215, %v723_v9  }
  0x27   : > { %736 = vperm.xlu1 %1214, %v722_v10  }
  0x87   : > { %v559_v18 = vpop.permute.xlu1 %558  ;;  %v524_v19 = vpop.permute.xlu0 %523 }
  0x88   : > { %v550_v34 = vmul.f32 %v545_v26, %v524_v19  ;;  %v551_v35 = vmul.f32 %v549_v27, %v524_v19 }
  0x8a   : > { %v566_v46 = vadd.f32 %v559_v18, %v550_v34  ;;  %v567_v47 = vadd.f32 %v559_v18, %v551_v35 }
  0x8b   : > { %v564_v28 = vpop.permute.xlu1 %563  ;;  %v529_v29 = vpop.permute.xlu0 %528 }
  0x8c   : > { %v552_v36 = vmul.f32 %v545_v26, %v529_v29  ;;  %v553_v37 = vmul.f32 %v549_v27, %v529_v29  ;;  %v1218_v29 = vld [vmem:[%s1440_s5 + $0x8] sm:$0xff]  }
  0x8e   : > { %v568_v48 = vadd.f32 %v564_v28, %v552_v36  ;;  %v569_v49 = vadd.f32 %v564_v28, %v553_v37  ;;  %v1217_v28 = vld [vmem:[%s1440_s5] sm:$0xff]  }
  0x90   : > { %v576_v38 = vpop.permute.xlu1 %575  ;;  %v572_v39 = vpop.permute.xlu0 %571 }
  0x91   : > { %v598_v40 = vmul.f32 %v591_v30, %v576_v38  ;;  %v599_v41 = vmul.f32 %v595_v31, %v576_v38  ;;  %v596_v42 = vmul.f32 %v591_v30, %v572_v39  ;;  %v597_v43 = vmul.f32 %v595_v31, %v572_v39 }
  0x93   : > { %v602_v50 = vadd.f32 %v598_v40, %v568_v48  ;;  %v603_v51 = vadd.f32 %v599_v41, %v569_v49  ;;  %v600_v52 = vadd.f32 %v596_v42, %v566_v46  ;;  %v601_v53 = vadd.f32 %v597_v43, %v567_v47 }
  0x95   : > { %v606_v54 = vpop.permute.xlu1 %605  ;;  %v610_v55 = vpop.permute.xlu0 %609 }
  0x96   : > { %v630_v56 = vmul.f32 %v625_v44, %v606_v54  ;;  %v631_v57 = vmul.f32 %v629_v45, %v606_v54  ;;  %v632_v58 = vmul.f32 %v625_v44, %v610_v55  ;;  %v633_v59 = vmul.f32 %v629_v45, %v610_v55 }
  0x98   : > { %v634_v60 = vadd.f32 %v630_v56, %v600_v52  ;;  %v636_v61 = vadd.f32 %v632_v58, %v602_v50  ;;  %v635_v62 = vadd.f32 %v631_v57, %v601_v53  ;;  %v637_v63 = vadd.f32 %v633_v59, %v603_v51 }
  0x99   : > { %v1254_v56 = vmov 1966171168  }
  0x9a   : > { %v639_v0 = vmax.f32 %v635_v62, 0.0  ;;  %v641_v1 = vmax.f32 %v637_v63, 0.0  ;;  %v638_v3 = vmax.f32 %v634_v60, 0.0  ;;  %v640_v4 = vmax.f32 %v636_v61, 0.0  ;;  %v651_v10 = vpop.permute.xlu1 %650 }
  0x9b   : > { %v841_v57 = vunpack.c.l.s4 %v1254_v56 }
  0x9c   : > { %v645_v5 = vpack.c.bf16 %v641_v1, %v639_v0  ;;  %v644_v6 = vpack.c.bf16 %v640_v4, %v638_v3 }
  0x9d   : > { %v842_v58 = vunpack.c.0.s8 %v841_v57 }
  0x9e   : > { %667 = vmatprep.subr.bf16.mxu0 %v645_v5  ;;  %v656_v16 = vpop.permute.xlu1 %655 }
  0x9f   : > { %668 = vmatpush1.bf16.msra.mxu0 %v644_v6  ;;  %v727_v30 = vpop.permute.xlu0 %726  ;;  %v845_v60 = vsub.s32 %v842_v58, %v1371_v12 }
  0xa2   : > { %1165 = vmatmul.mubr.msk.bf16.vlgmr.msra.gmra.mrb[0].mxu0 %vm663_vm0, %v1216_v7  ;;  %v732_v34 = vpop.permute.xlu1 %731 }
  0xa3   : > { %v742_v46 = vpop.permute.xlu0 %741 }
  0xa6   : > { %v737_v42 = vpop.permute.xlu1 %736 }
 0x175   : > { %v701_v13 = vpop.f32.mrb[0].mxu0 }
 0x176   : > { %v702_v14 = vadd.f32 %v701_v13, %v651_v10  ;;  %v703_v15 = vpop.f32.mrb[1].mxu0 }
 0x177   : > { %v704_v17 = vadd.f32 %v703_v15, %v651_v10  ;;  %v705_v18 = vpop.f32.mrb[2].mxu0 }
 0x178   : > { %v706_v19 = vadd.f32 %v705_v18, %v656_v16  ;;  %v707_v20 = vpop.f32.mrb[3].mxu0  ;;  %v710_v22 = vmax.f32 %v702_v14, 0.0 }
 0x179   : > { %v708_v21 = vadd.f32 %v707_v20, %v656_v16  ;;  %v711_v24 = vmax.f32 %v704_v17, 0.0 }
 0x17a   : > { %v712_v23 = vmax.f32 %v706_v19, 0.0 }
 0x17b   : > { %v713_v25 = vmax.f32 %v708_v21, 0.0 }
 0x17c   : > { %v718_v26 = vpack.c.bf16 %v712_v23, %v710_v22 }
 0x17d   : > { %v719_v27 = vpack.c.bf16 %v713_v25, %v711_v24 }
 0x17f   : > { %760 = vmatprep.subr.bf16.mxu1 %v719_v27 }
 0x180   : > { %761 = vmatpush1.bf16.msra.mxu1 %v718_v26 }
 0x183   : > { %1168 = vmatmul.mubr.msk.bf16.vlgmr.msra.gmra.mrb[0].mxu1 %vm663_vm0, %v1217_v28 }
 0x184   : > { %802 = vmatprep.mubr.bf16.mxu1 %v1251_v2 }
 0x18b   : > { %1169 = vmatmul.mubr.msk.bf16.gmra.mrb[4].mxu1 %vm663_vm0, %v1218_v29 }
 0x256   : > { %v794_v31 = vpop.f32.mrb[0].mxu1 }
 0x257   : > { %v795_v32 = vadd.f32 %v794_v31, %v727_v30  ;;  %v796_v33 = vpop.f32.mrb[1].mxu1 }
 0x258   : > { %v797_v35 = vadd.f32 %v796_v33, %v727_v30  ;;  %v798_v2 = vpop.f32.mrb[2].mxu1 }
 0x259   : > { %v1171_v36 = vmul.f32 -1.442695, %v795_v32  ;;  %v799_v37 = vadd.f32 %v798_v2, %v732_v34  ;;  %v800_v38 = vpop.f32.mrb[3].mxu1 }
 0x25a   : > { %v815_v39 = vcombine.low %v795_v32, %v797_v35  ;;  %v1172_v40 = vmul.f32 -1.442695, %v797_v35  ;;  %v801_v41 = vadd.f32 %v800_v38, %v732_v34 }
 0x25b   : > { %1219 = vpow2.f32 %v1171_v36  ;;  %861 = vst [vmem:[%s495_s25] sm:$0xff] %v799_v37 }
 0x25c   : > { %1170 = vst.sshfl [vmem:[%s476_s28] sm:$0x33 pattern:$0x76325410] %v815_v39  ;;  %1221 = vpow2.f32 %v1172_v40  ;;  %862 = vst [vmem:[%s495_s25 + $0x8] sm:$0xff] %v801_v41 }
 0x25e   : > { %v804_v43 = vpop.f32.mrb[4].mxu1 }
 0x25f   : > { %v805_v44 = vadd.f32 %v804_v43, %v737_v42  ;;  %v806_v45 = vpop.f32.mrb[5].mxu1 }
 0x260   : > { %v807_v47 = vadd.f32 %v806_v45, %v737_v42  ;;  %v808_v48 = vpop.f32.mrb[6].mxu1 }
 0x261   : > { %863 = vst [vmem:[%s505_s12] sm:$0xff] %v805_v44  ;;  %v809_v49 = vadd.f32 %v808_v48, %v742_v46  ;;  %v810_v50 = vpop.f32.mrb[7].mxu1 }
 0x262   : > { %864 = vst [vmem:[%s505_s12 + $0x8] sm:$0xff] %v807_v47  ;;  %v811_v51 = vadd.f32 %v810_v50, %v742_v46 }
 0x263   : > { %865 = vst [vmem:[%s515_s15] sm:$0xff] %v809_v49 }
 0x264   : > { %866 = vst [vmem:[%s515_s15 + $0x8] sm:$0xff] %v811_v51 }
 0x265   : > { %v1220_v52 = vpop.eup %1219 }
 0x266   : > { %v1222_v53 = vpop.eup %1221  ;;  %v831_v54 = vadd.f32 1.0, %v1220_v52 }
 0x267   : > { %v832_v55 = vadd.f32 1.0, %v1222_v53 }
 0x268   : > { %1223 = vrcp.f32 %v831_v54 }
 0x269   : > { %1225 = vrcp.f32 %v832_v55 }
 0x272   : > { %v1224_v59 = vpop.eup %1223 }
 0x273   : > { %v1226_v61 = vpop.eup %1225 }
 0x274   : > { %v839_v62 = vcombine.low %v1224_v59, %v1226_v61 }
 0x276   : > { %v846_v63 = vrot.slane %v839_v62, %v845_v60 }
 0x278   : > { %v853_v0 = vrot.slane %v846_v63, %v845_v60 }
 0x27a   : > { %v854_v1 = vcombine.high %v853_v0, %v853_v0 }
 0x27c   : > { %860 = vst.msk [vmem:[%s485_s23] sm:$0x3] %vm858_vm1, %v854_v1 }
 0x27d PF: > { %s22_s19 = sadd.s32 1, %s1249_s19   ;;  %s1447_s17 = smov %s1245_s18 }
 0x27e   : > { %p19_p5 = scmp.ge.s32.totalorder %s22_s19, 4   ;;  %s1448_s18 = smov %s1450_s20 }
 0x280   :  { %21 = sbr.rel (!%p19_p5) target bundleno = 2 (0x2), region = 126 }

</bundles_post_ra>
